<compile_context>
chip_gen: v7x
topology: tpu7x:2x2x1
jax: 0.10.0
libtpu: 0.0.40
codegen_flags: <defaults>
</compile_context>

<pallas_src>
import functools

import jax
import jax.numpy as jnp
from jax.experimental import pallas as pl
from jax.experimental.pallas import tpu as pltpu

_LANES = 128
_ACC_ROWS = 32                              # per-core accumulator height (4 f32 vregs)
_INPUT_BUFFER_BYTES = 16 * 1024 * 1024      # budget for 2 inputs x 2 pipeline buffers
_VMEM_LIMIT_BYTES = 32 * 1024 * 1024        # raises v5e's 16 MiB default; default elsewhere


def _round_up(x: int, m: int) -> int:
    return ((x + m - 1) // m) * m


def _tensorcores_per_chip() -> int:
    """Best-effort TensorCore-per-chip detection (2 on v7x-class chips).

    Falls back to 1, which is always safe: no wasted clamped-tile DMA/compute
    on the single-TC v5e/v6e generations."""
    try:
        info = pltpu.get_tpu_info()
    except Exception:
        return 1
    for name in ("num_tensorcores", "tensorcores_per_chip", "num_cores",
                 "cores_per_chip", "core_count"):
        val = getattr(info, name, None)
        if val is None:
            continue
        try:
            val = int(val)
        except (TypeError, ValueError):
            continue
        if 1 <= val <= 16:
            return val
    return 1


def _huber_sum_kernel(x_ref, y_ref, o_ref, *, valid_rows, tile_rows,
                      inner_steps, acc_rows):
    """Fold this (tile_rows, 128) tile's smooth-L1 sum onto the resident
    (acc_rows, 128) partial-sum block owned by the current core."""
    c = pl.program_id(0)   # core-split axis ("parallel")
    i = pl.program_id(1)   # row-tile reduction axis ("arbitrary")

    @pl.when(i == 0)
    def _():
        o_ref[...] = jnp.zeros_like(o_ref)

    row0 = (c * inner_steps + i) * tile_rows
    groups = tile_rows // acc_rows

    def smooth_l1(x, y):
        d = x.astype(jnp.float32) - y.astype(jnp.float32)
        a = jnp.abs(d)
        return jnp.where(a < 1.0, 0.5 * d * d, a - 0.5)

    def fold(elem):
        # Widened accumulator: acc_rows/8 independent vadd chains instead of a
        # single serial chain onto one vreg.
        o_ref[...] += jnp.sum(elem.reshape(groups, acc_rows, _LANES), axis=0)

    is_full = row0 + tile_rows <= valid_rows

    @pl.when(is_full)
    def _():
        # Fast path: interior tile, no iota / row mask.
        fold(smooth_l1(x_ref[...], y_ref[...]))

    @pl.when(jnp.logical_not(is_full))
    def _():
        # Ragged last tile and clamped (fully out-of-range) tiles: zero rows
        # that fall outside the logical array BEFORE accumulating, so any
        # garbage (even NaN/Inf) in the over-read region is discarded.
        elem = smooth_l1(x_ref[...], y_ref[...])
        local_row = jax.lax.broadcasted_iota(jnp.int32, (tile_rows, _LANES), 0)
        fold(jnp.where(row0 + local_row < valid_rows, elem, 0.0))


def huber_loss(logits: jax.Array, labels: jax.Array) -> jax.Array:
    """SmoothL1Loss(mean) over arbitrarily-shaped (but equal-shaped) inputs."""
    assert logits.shape == labels.shape, "logits/labels must match in shape"
    n_elems = logits.size

    x = logits.reshape(-1)
    y = labels.reshape(-1)

    rem = n_elems % _LANES
    if rem:
        # Only non-lane-aligned sizes pay this (<128-element) pad; zero-padding
        # both operands adds exactly 0.5 * 0^2 = 0 to the sum.
        pad = _LANES - rem
        x = jnp.pad(x, (0, pad))
        y = jnp.pad(y, (0, pad))

    rows = x.size // _LANES
    x2 = x.reshape(rows, _LANES)   # free, lane-dense view
    y2 = y.reshape(rows, _LANES)

    itemsize = jnp.dtype(logits.dtype).itemsize
    # Packed-sublane minimum tile: 8 rows (f32), 16 (bf16/f16), 32 (int8/fp8).
    pack = {1: 32, 2: 16}.get(itemsize, 8)
    # Accumulator height: up to 32 rows, shrunk (never below `pack`) for tiny
    # inputs so the block matches the array exactly when possible.
    acc_rows = min(_ACC_ROWS, _round_up(rows, pack))

    # Largest row tile whose double-buffered input blocks (2 inputs x 2 bufs)
    # fit the 16 MiB budget: 8192 rows for f32, 16384 for bf16.
    max_rows = _INPUT_BUFFER_BYTES // (4 * _LANES * itemsize)
    max_rows = max(_ACC_ROWS, (max_rows // _ACC_ROWS) * _ACC_ROWS)
    tile_rows = min(max_rows, _round_up(rows, acc_rows))

    nblocks = pl.cdiv(rows, tile_rows)
    # Core split only where it can help: clamp to the number of row tiles and
    # to the number of TensorCores on this chip (1 on v5e/v6e).
    ncores = max(1, min(_tensorcores_per_chip(), nblocks))
    inner = pl.cdiv(nblocks, ncores)

    def in_map(c, i):
        # Clamp so the second core's tail steps never index past the array;
        # their contribution is zeroed by the in-kernel row mask.
        return (jnp.minimum(c * inner + i, nblocks - 1), 0)

    partials = pl.pallas_call(
        functools.partial(
            _huber_sum_kernel,
            valid_rows=rows,
            tile_rows=tile_rows,
            inner_steps=inner,
            acc_rows=acc_rows,
        ),
        out_shape=jax.ShapeDtypeStruct((ncores * acc_rows, _LANES), jnp.float32),
        grid_spec=pltpu.PrefetchScalarGridSpec(
            num_scalar_prefetch=0,
            grid=(ncores, inner),
            in_specs=[
                pl.BlockSpec((tile_rows, _LANES), in_map),
                pl.BlockSpec((tile_rows, _LANES), in_map),
            ],
            out_specs=pl.BlockSpec((acc_rows, _LANES), lambda c, i: (c, 0)),
        ),
        compiler_params=pltpu.CompilerParams(
            dimension_semantics=("parallel", "arbitrary"),
            vmem_limit_bytes=_VMEM_LIMIT_BYTES,
        ),
        cost_estimate=pl.CostEstimate(
            flops=5 * n_elems,
            transcendentals=0,
            bytes_accessed=2 * n_elems * itemsize
            + ncores * acc_rows * _LANES * 4,
        ),
    )(x2, y2)

    total = jnp.sum(partials)  # tiny (<=64, 128) reduce in the wrapper
    return (total / jnp.float32(n_elems)).astype(logits.dtype)


def _reference(logits, labels):
    d = logits.astype(jnp.float32) - labels.astype(jnp.float32)
    a = jnp.abs(d)
    return jnp.mean(jnp.where(a < 1.0, 0.5 * d * d, a - 0.5))


if __name__ == "__main__":
    key = jax.random.PRNGKey(0)
    k1, k2, k3, k4 = jax.random.split(key, 4)

    # Small NCHW-shaped inputs, as the module's forward takes (logits, labels).
    logits = jax.random.normal(k1, (2, 4, 16, 16), dtype=jnp.float32)
    labels = jax.random.normal(k2, (2, 4, 16, 16), dtype=jnp.float32)

    out = huber_loss(logits, labels)
    jax.block_until_ready(out)
    ref = _reference(logits, labels)
    assert jnp.allclose(out, ref, rtol=1e-5, atol=1e-6), (out, ref)

    # Ragged (non-lane-aligned) shape: exercises the masked tail path.
    logits2 = jax.random.normal(k3, (3, 5, 7, 11), dtype=jnp.float32) * 2.0
    labels2 = jax.random.normal(k4, (3, 5, 7, 11), dtype=jnp.float32)
    out2 = huber_loss(logits2, labels2)
    jax.block_until_ready(out2)
    ref2 = _reference(logits2, labels2)
    assert jnp.allclose(out2, ref2, rtol=1e-5, atol=1e-6), (out2, ref2)

    print("KERNEL_OK")
</pallas_src>

<mosaic_0001>
module attributes {stable_mosaic.version = 11 : i64} {
  func.func @_huber_sum_kernel(%arg0: i32, %arg1: i32, %arg2: memref<16x128xf32, #tpu.memory_space<vmem>>, %arg3: memref<16x128xf32, #tpu.memory_space<vmem>>, %arg4: memref<16x128xf32, #tpu.memory_space<vmem>>) attributes {dimension_semantics = [#tpu.dimension_semantics<parallel>, #tpu.dimension_semantics<arbitrary>], iteration_bounds = array<i64: 1, 1>, scalar_prefetch = 0 : i64, scratch_operands = 0 : i64, tpu.core_type = #tpu.core_type<tc>, window_params = [{transform_indices = @transform_0, window_bounds = array<i64: 16, 128>}, {transform_indices = @transform_1, window_bounds = array<i64: 16, 128>}, {transform_indices = @transform_2, window_bounds = array<i64: 16, 128>}]} {
    %c0_i32 = arith.constant 0 : i32
    %0 = arith.cmpi eq, %arg1, %c0_i32 : i32
    %1 = arith.extui %0 : i1 to i32
    %c0_i32_0 = arith.constant 0 : i32
    %2 = arith.cmpi ne, %1, %c0_i32_0 : i32
    scf.if %2 {
      %cst = arith.constant 0.000000e+00 : f32
      %13 = vector.broadcast %cst : f32 to vector<16x128xf32>
      %c0 = arith.constant 0 : index
      %c0_5 = arith.constant 0 : index
      %14 = vector.load %arg4[%c0, %c0_5] : memref<16x128xf32, #tpu.memory_space<vmem>>, vector<16x128xf32>
      tpu.vector_store %arg4[%c0, %c0_5], %13 {strides = array<i32>} : memref<16x128xf32, #tpu.memory_space<vmem>>, vector<16x128xf32>,
    } else {
    }
    %c1_i32 = arith.constant 1 : i32
    %3 = arith.muli %arg0, %c1_i32 : i32
    %4 = arith.addi %3, %arg1 : i32
    %c16_i32 = arith.constant 16 : i32
    %5 = arith.muli %4, %c16_i32 : i32
    %c16_i32_1 = arith.constant 16 : i32
    %6 = arith.addi %5, %c16_i32_1 : i32
    %c16_i32_2 = arith.constant 16 : i32
    %7 = arith.cmpi sle, %6, %c16_i32_2 : i32
    %8 = arith.extui %7 : i1 to i32
    %c0_i32_3 = arith.constant 0 : i32
    %9 = arith.cmpi ne, %8, %c0_i32_3 : i32
    scf.if %9 {
      %c0 = arith.constant 0 : index
      %c0_5 = arith.constant 0 : index
      %13 = vector.load %arg2[%c0, %c0_5] : memref<16x128xf32, #tpu.memory_space<vmem>>, vector<16x128xf32>
      %c0_6 = arith.constant 0 : index
      %c0_7 = arith.constant 0 : index
      %14 = vector.load %arg3[%c0_6, %c0_7] : memref<16x128xf32, #tpu.memory_space<vmem>>, vector<16x128xf32>
      %15 = arith.subf %13, %14 : vector<16x128xf32>
      %16 = math.absf %15 : vector<16x128xf32>
      %cst = arith.constant 1.000000e+00 : f32
      %17 = vector.broadcast %cst : f32 to vector<16x128xf32>
      %18 = arith.cmpf olt, %16, %17 : vector<16x128xf32>
      %cst_8 = arith.constant 5.000000e-01 : f32
      %19 = vector.broadcast %cst_8 : f32 to vector<16x128xf32>
      %20 = arith.mulf %19, %15 : vector<16x128xf32>
      %21 = arith.mulf %20, %15 : vector<16x128xf32>
      %cst_9 = arith.constant 5.000000e-01 : f32
      %22 = vector.broadcast %cst_9 : f32 to vector<16x128xf32>
      %23 = arith.subf %16, %22 : vector<16x128xf32>
      %24 = arith.select %18, %21, %23 : vector<16x128xi1>, vector<16x128xf32>
      %c0_10 = arith.constant 0 : index
      %c0_11 = arith.constant 0 : index
      %25 = vector.load %arg4[%c0_10, %c0_11] : memref<16x128xf32, #tpu.memory_space<vmem>>, vector<16x128xf32>
      %26 = vector.shape_cast %24 : vector<16x128xf32> to vector<1x16x128xf32>
      %cst_12 = arith.constant dense<0.000000e+00> : vector<16x128xf32>
      %27 = vector.multi_reduction <add>, %26, %cst_12 [0] : vector<1x16x128xf32> to vector<16x128xf32>
      %28 = arith.addf %25, %27 : vector<16x128xf32>
      %c0_13 = arith.constant 0 : index
      %c0_14 = arith.constant 0 : index
      %29 = vector.load %arg4[%c0_13, %c0_14] : memref<16x128xf32, #tpu.memory_space<vmem>>, vector<16x128xf32>
      tpu.vector_store %arg4[%c0_13, %c0_14], %28 {strides = array<i32>} : memref<16x128xf32, #tpu.memory_space<vmem>>, vector<16x128xf32>,
    } else {
    }
    %true = arith.constant true
    %10 = arith.xori %7, %true : i1
    %11 = arith.extui %10 : i1 to i32
    %c0_i32_4 = arith.constant 0 : i32
    %12 = arith.cmpi ne, %11, %c0_i32_4 : i32
    scf.if %12 {
      %c0 = arith.constant 0 : index
      %c0_5 = arith.constant 0 : index
      %13 = vector.load %arg2[%c0, %c0_5] : memref<16x128xf32, #tpu.memory_space<vmem>>, vector<16x128xf32>
      %c0_6 = arith.constant 0 : index
      %c0_7 = arith.constant 0 : index
      %14 = vector.load %arg3[%c0_6, %c0_7] : memref<16x128xf32, #tpu.memory_space<vmem>>, vector<16x128xf32>
      %15 = arith.subf %13, %14 : vector<16x128xf32>
      %16 = math.absf %15 : vector<16x128xf32>
      %cst = arith.constant 1.000000e+00 : f32
      %17 = vector.broadcast %cst : f32 to vector<16x128xf32>
      %18 = arith.cmpf olt, %16, %17 : vector<16x128xf32>
      %cst_8 = arith.constant 5.000000e-01 : f32
      %19 = vector.broadcast %cst_8 : f32 to vector<16x128xf32>
      %20 = arith.mulf %19, %15 : vector<16x128xf32>
      %21 = arith.mulf %20, %15 : vector<16x128xf32>
      %cst_9 = arith.constant 5.000000e-01 : f32
      %22 = vector.broadcast %cst_9 : f32 to vector<16x128xf32>
      %23 = arith.subf %16, %22 : vector<16x128xf32>
      %24 = arith.select %18, %21, %23 : vector<16x128xi1>, vector<16x128xf32>
      %25 = tpu.iota {dimensions = array<i32: 0>} : vector<16x128xi32>
      %26 = vector.broadcast %5 : i32 to vector<16x128xi32>
      %27 = arith.addi %26, %25 : vector<16x128xi32>
      %c16_i32_10 = arith.constant 16 : i32
      %28 = vector.broadcast %c16_i32_10 : i32 to vector<16x128xi32>
      %29 = arith.cmpi slt, %27, %28 : vector<16x128xi32>
      %cst_11 = arith.constant 0.000000e+00 : f32
      %30 = vector.broadcast %cst_11 : f32 to vector<16x128xf32>
      %31 = arith.select %29, %24, %30 : vector<16x128xi1>, vector<16x128xf32>
      %c0_12 = arith.constant 0 : index
      %c0_13 = arith.constant 0 : index
      %32 = vector.load %arg4[%c0_12, %c0_13] : memref<16x128xf32, #tpu.memory_space<vmem>>, vector<16x128xf32>
      %33 = vector.shape_cast %31 : vector<16x128xf32> to vector<1x16x128xf32>
      %cst_14 = arith.constant dense<0.000000e+00> : vector<16x128xf32>
      %34 = vector.multi_reduction <add>, %33, %cst_14 [0] : vector<1x16x128xf32> to vector<16x128xf32>
      %35 = arith.addf %32, %34 : vector<16x128xf32>
      %c0_15 = arith.constant 0 : index
      %c0_16 = arith.constant 0 : index
      %36 = vector.load %arg4[%c0_15, %c0_16] : memref<16x128xf32, #tpu.memory_space<vmem>>, vector<16x128xf32>
      tpu.vector_store %arg4[%c0_15, %c0_16], %35 {strides = array<i32>} : memref<16x128xf32, #tpu.memory_space<vmem>>, vector<16x128xf32>,
    } else {
    }
    return
  }
  func.func @transform_0(%arg0: i32, %arg1: i32) -> (i32, i32) {
    %c1_i32 = arith.constant 1 : i32
    %0 = arith.muli %arg0, %c1_i32 : i32
    %1 = arith.addi %0, %arg1 : i32
    %c0_i32 = arith.constant 0 : i32
    %2 = arith.minsi %1, %c0_i32 : i32
    %c0_i32_0 = arith.constant 0 : i32
    %c0_i32_1 = arith.constant 0 : i32
    return %2, %c0_i32_0 : i32, i32
  }
  func.func @transform_1(%arg0: i32, %arg1: i32) -> (i32, i32) {
    %c1_i32 = arith.constant 1 : i32
    %0 = arith.muli %arg0, %c1_i32 : i32
    %1 = arith.addi %0, %arg1 : i32
    %c0_i32 = arith.constant 0 : i32
    %2 = arith.minsi %1, %c0_i32 : i32
    %c0_i32_0 = arith.constant 0 : i32
    %c0_i32_1 = arith.constant 0 : i32
    return %2, %c0_i32_0 : i32, i32
  }
  func.func @transform_2(%arg0: i32, %arg1: i32) -> (i32, i32) {
    %c0_i32 = arith.constant 0 : i32
    %c0_i32_0 = arith.constant 0 : i32
    return %arg0, %c0_i32 : i32, i32
  }
}

</mosaic_0001>

<bundles_post_ra>
// kernel: tpu_custom_call.1
= control target key start
LH: loop header
LB: loop body
LE: loop exit
PB: predicated region body
PF: predicated region fallthrough
CT: control target
= control target key end

     0   :  { %7 = vsyncpa [#allocation3], 0  ;;  %s308_s0 = inlined_call_operand.hbm [shape: f32[16,128], index: 0, kind: input, shape index: {}]   ;;  %s309_s1 = inlined_call_operand.hbm [shape: f32[16,128], index: 1, kind: input, shape index: {}]   ;;  %s310_s2 = inlined_call_operand.hbm [shape: f32[16,128], index: 2, kind: output, shape index: {}]  }
   0x1   :  { %8 = vsyncpa [#allocation6], 0 }
   0x2   :  { %9 = vsyncpa [#allocation4], 0  ;;  %s243_s9 = smov [#allocation2]   ;;  %s171_s13 = scalar_lea.hbm %s308_s0, 256 }
   0x3   :  { %s21_s10 = sshll.u32 %s243_s9, 4  ;;  %p172_p0 = scmp.ne.s32.totalorder %s308_s0, %s171_s13  ;;  %s22_s10 = int_to_ptr.vmem [resolvable:$true] %s21_s10 }
   0x4   :  { %p175_p1 = scmp.lt.u32.totalorder %s171_s13, %s308_s0 }
   0x6   :  { %p177_p2 = pnand %p175_p1, %p172_p0 }
   0x8   :  { %180 = shalt.err (!%p177_p2)
}
   0x9   :  { %s181_s18 = scalar_lea.vmem %s22_s10, 256  ;;  %p186_p4 = scmp.lt.s32.totalorder %s22_s10, %s22_s10 }
   0xa   :  { %p182_p3 = scmp.ne.s32.totalorder %s22_s10, %s181_s18  ;;  %p187_p5 = scmp.lt.s32.totalorder %s181_s18, %s181_s18 }
   0xc   :  { %p188_p6 = por %p187_p5, %p186_p4 }
   0xe   :  { %p189_p7 = pnand %p188_p6, %p182_p3 }
  0x10   :  { %192 = shalt.err (!%p189_p7)
}
  0x11   :  { %s244_s19 = smov 128   ;;  %s245_s20 = smov 8  }
  0x12   :  { %27 = dma.hbm_to_vmem [thread:$0]  %s308_s0, 256, %s22_s10, [#allocation3], %s244_s19, %s244_s19, %s245_s20  }
  0x13   :  { %s246_s23 = smov [#allocation5]   ;;  %s193_s27 = scalar_lea.hbm %s309_s1, 256 }
  0x14   :  { %s39_s24 = sshll.u32 %s246_s23, 4  ;;  %p194_p8 = scmp.ne.s32.totalorder %s309_s1, %s193_s27  ;;  %s40_s24 = int_to_ptr.vmem [resolvable:$true] %s39_s24 }
  0x15   :  { %p197_p9 = scmp.lt.u32.totalorder %s193_s27, %s309_s1 }
  0x17   :  { %p199_p10 = pnand %p197_p9, %p194_p8 }
  0x19   :  { %202 = shalt.err (!%p199_p10)
}
  0x1a   :  { %s203_s4 = scalar_lea.vmem %s40_s24, 256  ;;  %p208_p12 = scmp.lt.s32.totalorder %s40_s24, %s40_s24 }
  0x1b   :  { %p204_p11 = scmp.ne.s32.totalorder %s40_s24, %s203_s4  ;;  %p209_p13 = scmp.lt.s32.totalorder %s203_s4, %s203_s4 }
  0x1d   :  { %p210_p0 = por %p209_p13, %p208_p12 }
  0x1f   :  { %p211_p1 = pnand %p210_p0, %p204_p11 }
  0x21   :  { %214 = shalt.err (!%p211_p1)
}
  0x22   :  { %45 = dma.hbm_to_vmem [thread:$0]  %s309_s1, 256, %s40_s24, [#allocation6], %s244_s19, %s244_s19, %s245_s20  }
  0x23   :  { %237 = dma.done.wait [#allocation3], 256  }
  0x24   :  { %238 = vsyncadd [#allocation3], 4294967040 }
  0x25   :  { %239 = dma.done.wait [#allocation6], 256  }
  0x26   :  { %240 = vsyncadd [#allocation6], 4294967040  ;;  %v73_v0 = vld [vmem:[#allocation2] sm:$0xff]  ;;  %v75_v1 = vld [vmem:[#allocation5] sm:$0xff]  ;;  %s247_s1 = smov [#allocation7]  }
  0x27   :  { %v74_v2 = vld [vmem:[#allocation2 + $0x8] sm:$0xff]  ;;  %v77_v3 = vsub.f32 %v73_v0, %v75_v1  ;;  %v76_v4 = vld [vmem:[#allocation5 + $0x8] sm:$0xff]  ;;  %s144_s6 = sshll.u32 %s247_s1, 4  ;;  %s145_s6 = int_to_ptr.vmem [resolvable:$true] %s144_s6 }
  0x28   :  { %v78_v5 = vsub.f32 %v74_v2, %v76_v4  ;;  %s215_s7 = scalar_lea.vmem %s145_s6, 256  ;;  %p220_p3 = scmp.lt.s32.totalorder %s145_s6, %s145_s6 }
  0x29   :  { %v79_v6 = vand.u32 2147483647, %v77_v3  ;;  %v83_v7 = vmul.f32 0.5, %v77_v3  ;;  %p216_p2 = scmp.ne.s32.totalorder %s145_s6, %s215_s7  ;;  %p221_p4 = scmp.lt.s32.totalorder %s215_s7, %s215_s7 }
  0x2a   :  { %v80_v8 = vand.u32 2147483647, %v78_v5  ;;  %v84_v9 = vmul.f32 0.5, %v78_v5 }
  0x2b   :  { %vm81_vm0 = vcmp.lt.f32.partialorder %v79_v6, 1.0  ;;  %v85_v10 = vmul.f32 %v83_v7, %v77_v3  ;;  %v161_v11 = vadd.f32 -0.5, %v79_v6  ;;  %p222_p5 = por %p221_p4, %p220_p3 }
  0x2c   :  { %vm82_vm1 = vcmp.lt.f32.partialorder %v80_v8, 1.0  ;;  %v86_v12 = vmul.f32 %v84_v9, %v78_v5  ;;  %v162_v13 = vadd.f32 -0.5, %v80_v8 }
  0x2d   :  { %v89_v14 = vsel %vm81_vm0, %v85_v10, %v161_v11  ;;  %p223_p6 = pnand %p222_p5, %p216_p2 }
  0x2e   :  { %v90_v15 = vsel %vm82_vm1, %v86_v12, %v162_v13  ;;  %97 = vst [vmem:[#allocation7] sm:$0xff] %v89_v14 }
  0x2f   :  { %98 = vst [vmem:[#allocation7 + $0x8] sm:$0xff] %v90_v15 }
  0x30   :  { %226 = shalt.err (!%p223_p6)
}
  0x31   :  { %s227_s10 = scalar_lea.hbm %s310_s2, 256 }
  0x32   :  { %p228_p7 = scmp.ne.s32.totalorder %s310_s2, %s227_s10  ;;  %p231_p8 = scmp.lt.u32.totalorder %s227_s10, %s310_s2 }
  0x34   :  { %p233_p9 = pnand %p231_p8, %p228_p7 }
  0x36   :  { %236 = shalt.err (!%p233_p9)
}
  0x37   :  { %150 = dma.vmem_to_hbm [thread:$0]  %s145_s6, 256, %s310_s2, [#allocation4], %s244_s19, %s244_s19, %s245_s20  }
  0x38   :  { %241 = dma.done.wait [#allocation4], 256  }
  0x39   :  { %242 = vsyncadd [#allocation4], 4294967040 }
  0x3a   :  { %154 = vsyncpa [#allocation3], 1 }
  0x3b   :  { %155 = vsyncpa [#allocation6], 1 }
  0x3c   :  { %156 = vsyncpa [#allocation4], 1 }

</bundles_post_ra>
